<compile_context>
chip_gen: v6e
topology: v6e:2x2x1
jax: 0.10.0
libtpu: 0.0.40
codegen_flags: <defaults>
</compile_context>

<pallas_src>
import functools

import jax
import jax.numpy as jnp
import numpy as np
from jax.experimental import pallas as pl
from jax.experimental.pallas import tpu as pltpu


# ----------------------------- kernel bodies --------------------------------

def _run_gru(h0, x, w_i, w_h, b_i, b_hn, *, T, B, H):
    """GRU recurrence with fused per-gate weights.

    x:    (T*B, N)  time-major slab, all timesteps
    w_i:  (N, 3H)   fused input weights,  column blocks [r | z | n]
    w_h:  (H, 3H)   fused hidden weights, column blocks [r | z | n]
    b_i:  (1, 3H)   fused biases: [b_ir+b_hr | b_iz+b_hz | b_in]
    b_hn: (1, H)    hidden bias of the n gate (inside r * (W_hn h + b_hn))
    """
    # Pre-phase: ONE MXU matmul over all timesteps and all gates.
    gi = jnp.dot(x, w_i, preferred_element_type=jnp.float32) + b_i       # (T*B, 3H)

    b_hn_b = jnp.broadcast_to(b_hn, (B, H))   # broadcast once, outside the loop

    h = h0
    # Fully unrolled recurrence (T static & small): one matmul + one sigmoid +
    # one tanh per step remain on the serial critical path.
    for t in range(T):
        lo = t * B
        gi_t = gi[lo:lo + B, :]                                           # (B, 3H)
        gh = jnp.dot(h, w_h, preferred_element_type=jnp.float32)          # (B, 3H)
        rz = jax.nn.sigmoid(gi_t[:, :2 * H] + gh[:, :2 * H])              # (B, 2H)
        r = rz[:, :H]
        z = rz[:, H:]
        n = jnp.tanh(gi_t[:, 2 * H:] + r * (gh[:, 2 * H:] + b_hn_b))
        h = (1.0 - z) * n + z * h
    return h


def _kernel_ini(uemb_ref, x_ref, wi_ref, wh_ref, bi_ref, bhn_ref, out_ref,
                *, T, B, H):
    # combine_type == 'ini': GRU hidden initialized with the long-term user rep.
    h = _run_gru(uemb_ref[...], x_ref[...], wi_ref[...], wh_ref[...],
                 bi_ref[...], bhn_ref[...], T=T, B=B, H=H)
    out_ref[...] = h.astype(out_ref.dtype)


def _kernel_con(uemb_ref, x_ref, wi_ref, wh_ref, bi_ref, bhn_ref,
                fcwt_ref, fcb_ref, out_ref, *, T, B, H):
    # combine_type == 'con': GRU starts from a zero hidden state.
    u = uemb_ref[...]
    h = _run_gru(jnp.zeros_like(u), x_ref[...], wi_ref[...], wh_ref[...],
                 bi_ref[...], bhn_ref[...], T=T, B=B, H=H)
    # fc(concat(h, u)) as a single (B, 2H) x (2H, H) matmul; fc_w.T prepared once.
    hu = jnp.concatenate([h, u], axis=1)                                   # (B, 2H)
    y = jnp.dot(hu, fcwt_ref[...], preferred_element_type=jnp.float32) + fcb_ref[...]
    out_ref[...] = y.astype(out_ref.dtype)


# --------------------------- parameter preparation ---------------------------

def prepare_user_encoder_params(params, combine_type="ini"):
    """One-time fusion of PyTorch-layout GRU/FC params into kernel-ready arrays."""
    H = params["user_embedding"].shape[1]
    wih, whh = params["w_ih"], params["w_hh"]    # (3H, N), (3H, H), rows = [r; z; n]
    bih, bhh = params["b_ih"], params["b_hh"]    # (1, 3H), (1, 3H)

    prep = {
        "user_embedding": params["user_embedding"],            # (num_users, H)
        # Transposing the stacked PyTorch weight yields the fused [r|z|n] layout.
        "w_i": wih.T,                                           # (N, 3H)
        "w_h": whh.T,                                           # (H, 3H)
        # Fold r/z biases; keep the n-gate input bias unfolded (hidden n bias is
        # applied inside r * (...)).
        "b_i": jnp.concatenate(
            [bih[:, :2 * H] + bhh[:, :2 * H], bih[:, 2 * H:]], axis=1),   # (1, 3H)
        "b_hn": bhh[:, 2 * H:],                                 # (1, H)
    }
    if combine_type == "con":
        prep["fc_wt"] = params["fc_w"].T                        # (2H, H)
        prep["fc_b"] = params["fc_b"]                           # (1, H)
    return prep


# ------------------------------- wrapper -------------------------------------

def user_encoder_forward(user_id, news_history, prep, combine_type="ini"):
    emb_table = prep["user_embedding"]
    B, T, N = news_history.shape
    H = emb_table.shape[1]

    # Embedding lookup (gather) is plain-JAX glue.
    long_term = emb_table[user_id]                              # (B, H)
    # TODO(synk): nn.Dropout on long_term is identity in eval mode; training-mode
    #             dropout is not modeled.

    # Time-major slab, all timesteps flattened for the fused input projection.
    x2d = jnp.transpose(news_history, (1, 0, 2)).reshape(T * B, N)   # (T*B, N)

    args = [long_term, x2d, prep["w_i"], prep["w_h"], prep["b_i"], prep["b_hn"]]
    if combine_type == "con":
        args += [prep["fc_wt"], prep["fc_b"]]
        kernel = functools.partial(_kernel_con, T=T, B=B, H=H)
    else:  # 'ini'
        kernel = functools.partial(_kernel_ini, T=T, B=B, H=H)

    def _full_spec(a):
        nd = a.ndim
        return pl.BlockSpec(a.shape, lambda *_, _nd=nd: (0,) * _nd)

    in_specs = [_full_spec(a) for a in args]

    return pl.pallas_call(
        kernel,
        out_shape=jax.ShapeDtypeStruct((B, H), jnp.float32),
        grid_spec=pltpu.PrefetchScalarGridSpec(
            num_scalar_prefetch=0,
            grid=(1,),                          # whole (toy-sized) problem in VMEM
            in_specs=in_specs,
            out_specs=pl.BlockSpec((B, H), lambda i: (0, 0)),
        ),
        compiler_params=pltpu.CompilerParams(
            dimension_semantics=("arbitrary",),
        ),
    )(*args)


# ------------------------------ reference ------------------------------------

def reference_forward(user_id, news_history, params, combine_type="ini"):
    long_term = params["user_embedding"][user_id]
    H = long_term.shape[-1]
    h0 = long_term if combine_type == "ini" else jnp.zeros_like(long_term)

    def step(h, x):
        gi = x @ params["w_ih"].T + params["b_ih"][0]
        gh = h @ params["w_hh"].T + params["b_hh"][0]
        r = jax.nn.sigmoid(gi[:, :H] + gh[:, :H])
        z = jax.nn.sigmoid(gi[:, H:2 * H] + gh[:, H:2 * H])
        n = jnp.tanh(gi[:, 2 * H:] + r * gh[:, 2 * H:])
        return (1.0 - z) * n + z * h, None

    h_final, _ = jax.lax.scan(step, h0, jnp.transpose(news_history, (1, 0, 2)))
    if combine_type == "con":
        combined = jnp.concatenate([h_final, long_term], axis=1)
        return combined @ params["fc_w"].T + params["fc_b"][0]
    return h_final


# --------------------------------- main ---------------------------------------

if __name__ == "__main__":
    # Small shapes consistent with the module:
    #   num_users=16, word_embedding_dim (H)=32, news_dim (N)=32,
    #   batch=8, history_length=8, num_gru_layers=1
    NUM_USERS, H, N, B, T = 16, 32, 32, 8, 8

    key = jax.random.PRNGKey(0)
    ks = jax.random.split(key, 10)
    scale = 0.1
    params = {
        "user_embedding": scale * jax.random.normal(ks[0], (NUM_USERS, H), jnp.float32),
        "w_ih": scale * jax.random.normal(ks[1], (3 * H, N), jnp.float32),
        "w_hh": scale * jax.random.normal(ks[2], (3 * H, H), jnp.float32),
        "b_ih": scale * jax.random.normal(ks[3], (1, 3 * H), jnp.float32),
        "b_hh": scale * jax.random.normal(ks[4], (1, 3 * H), jnp.float32),
        "fc_w": scale * jax.random.normal(ks[5], (H, 2 * H), jnp.float32),
        "fc_b": scale * jax.random.normal(ks[6], (1, H), jnp.float32),
    }

    user_id = jax.random.randint(ks[7], (B,), 0, NUM_USERS)
    news_history = jax.random.normal(ks[8], (B, T, N), jnp.float32)

    for combine_type in ("ini", "con"):
        prep = prepare_user_encoder_params(params, combine_type)   # one-time fusion
        out = user_encoder_forward(user_id, news_history, prep, combine_type)
        out = jax.block_until_ready(out)
        ref = reference_forward(user_id, news_history, params, combine_type)
        np.testing.assert_allclose(np.asarray(out), np.asarray(ref),
                                   rtol=1e-4, atol=1e-5)

    print("KERNEL_OK")
</pallas_src>

<mosaic_0001>
module attributes {stable_mosaic.version = 11 : i64} {
  func.func @_kernel_ini(%arg0: i32, %arg1: memref<8x32xf32, #tpu.memory_space<vmem>>, %arg2: memref<64x32xf32, #tpu.memory_space<vmem>>, %arg3: memref<32x96xf32, #tpu.memory_space<vmem>>, %arg4: memref<32x96xf32, #tpu.memory_space<vmem>>, %arg5: memref<1x96xf32, #tpu.memory_space<vmem>>, %arg6: memref<1x32xf32, #tpu.memory_space<vmem>>, %arg7: memref<8x32xf32, #tpu.memory_space<vmem>>) attributes {dimension_semantics = [#tpu.dimension_semantics<arbitrary>], iteration_bounds = array<i64: 1>, scalar_prefetch = 0 : i64, scratch_operands = 0 : i64, tpu.core_type = #tpu.core_type<tc>, window_params = [{pipeline_mode = #tpu.pipeline_mode<synchronous>, transform_indices = @transform_0, window_bounds = array<i64: 8, 32>}, {pipeline_mode = #tpu.pipeline_mode<synchronous>, transform_indices = @transform_1, window_bounds = array<i64: 64, 32>}, {pipeline_mode = #tpu.pipeline_mode<synchronous>, transform_indices = @transform_2, window_bounds = array<i64: 32, 96>}, {pipeline_mode = #tpu.pipeline_mode<synchronous>, transform_indices = @transform_3, window_bounds = array<i64: 32, 96>}, {pipeline_mode = #tpu.pipeline_mode<synchronous>, transform_indices = @transform_4, window_bounds = array<i64: 1, 96>}, {pipeline_mode = #tpu.pipeline_mode<synchronous>, transform_indices = @transform_5, window_bounds = array<i64: 1, 32>}, {pipeline_mode = #tpu.pipeline_mode<synchronous>, transform_indices = @transform_6, window_bounds = array<i64: 8, 32>}]} {
    %c0 = arith.constant 0 : index
    %c0_0 = arith.constant 0 : index
    %0 = vector.load %arg1[%c0, %c0_0] : memref<8x32xf32, #tpu.memory_space<vmem>>, vector<8x32xf32>
    %c0_1 = arith.constant 0 : index
    %c0_2 = arith.constant 0 : index
    %1 = vector.load %arg2[%c0_1, %c0_2] : memref<64x32xf32, #tpu.memory_space<vmem>>, vector<64x32xf32>
    %c0_3 = arith.constant 0 : index
    %c0_4 = arith.constant 0 : index
    %2 = vector.load %arg3[%c0_3, %c0_4] : memref<32x96xf32, #tpu.memory_space<vmem>>, vector<32x96xf32>
    %c0_5 = arith.constant 0 : index
    %c0_6 = arith.constant 0 : index
    %3 = vector.load %arg4[%c0_5, %c0_6] : memref<32x96xf32, #tpu.memory_space<vmem>>, vector<32x96xf32>
    %c0_7 = arith.constant 0 : index
    %c0_8 = arith.constant 0 : index
    %4 = vector.load %arg5[%c0_7, %c0_8] : memref<1x96xf32, #tpu.memory_space<vmem>>, vector<1x96xf32>
    %c0_9 = arith.constant 0 : index
    %c0_10 = arith.constant 0 : index
    %5 = vector.load %arg6[%c0_9, %c0_10] : memref<1x32xf32, #tpu.memory_space<vmem>>, vector<1x32xf32>
    %cst = arith.constant dense<0.000000e+00> : vector<64x96xf32>
    %6 = tpu.matmul %1, %2, %cst {dimension_numbers = #tpu.dot_dimension_numbers<[1], [0], [0], [1], [0, 0, 1, 1], [], []>} : vector<64x32xf32>, vector<32x96xf32>, vector<64x96xf32> -> vector<64x96xf32>
    %7 = vector.broadcast %4 : vector<1x96xf32> to vector<64x96xf32>
    %8 = arith.addf %6, %7 : vector<64x96xf32>
    %9 = vector.shape_cast %5 : vector<1x32xf32> to vector<1x32xf32>
    %10 = vector.broadcast %9 : vector<1x32xf32> to vector<8x32xf32>
    %11 = vector.extract_strided_slice %8 {offsets = [0, 0], sizes = [8, 96], strides = [1, 1]} : vector<64x96xf32> to vector<8x96xf32>
    %cst_11 = arith.constant dense<0.000000e+00> : vector<8x96xf32>
    %12 = tpu.matmul %0, %3, %cst_11 {dimension_numbers = #tpu.dot_dimension_numbers<[1], [0], [0], [1], [0, 0, 1, 1], [], []>} : vector<8x32xf32>, vector<32x96xf32>, vector<8x96xf32> -> vector<8x96xf32>
    %13 = vector.extract_strided_slice %11 {offsets = [0, 0], sizes = [8, 64], strides = [1, 1]} : vector<8x96xf32> to vector<8x64xf32>
    %14 = vector.extract_strided_slice %12 {offsets = [0, 0], sizes = [8, 64], strides = [1, 1]} : vector<8x96xf32> to vector<8x64xf32>
    %15 = arith.addf %13, %14 : vector<8x64xf32>
    %16 = arith.negf %15 : vector<8x64xf32>
    %17 = math.exp %16 : vector<8x64xf32>
    %cst_12 = arith.constant 1.000000e+00 : f32
    %18 = vector.broadcast %cst_12 : f32 to vector<8x64xf32>
    %19 = arith.addf %18, %17 : vector<8x64xf32>
    %20 = arith.divf %18, %19 : vector<8x64xf32>
    %21 = vector.extract_strided_slice %20 {offsets = [0, 0], sizes = [8, 32], strides = [1, 1]} : vector<8x64xf32> to vector<8x32xf32>
    %22 = vector.extract_strided_slice %20 {offsets = [0, 32], sizes = [8, 32], strides = [1, 1]} : vector<8x64xf32> to vector<8x32xf32>
    %23 = vector.extract_strided_slice %11 {offsets = [0, 64], sizes = [8, 32], strides = [1, 1]} : vector<8x96xf32> to vector<8x32xf32>
    %24 = vector.extract_strided_slice %12 {offsets = [0, 64], sizes = [8, 32], strides = [1, 1]} : vector<8x96xf32> to vector<8x32xf32>
    %25 = arith.addf %24, %10 : vector<8x32xf32>
    %26 = arith.mulf %21, %25 : vector<8x32xf32>
    %27 = arith.addf %23, %26 : vector<8x32xf32>
    %28 = math.tanh %27 : vector<8x32xf32>
    %cst_13 = arith.constant 1.000000e+00 : f32
    %29 = vector.broadcast %cst_13 : f32 to vector<8x32xf32>
    %30 = arith.subf %29, %22 : vector<8x32xf32>
    %31 = arith.mulf %30, %28 : vector<8x32xf32>
    %32 = arith.mulf %22, %0 : vector<8x32xf32>
    %33 = arith.addf %31, %32 : vector<8x32xf32>
    %34 = vector.extract_strided_slice %8 {offsets = [8, 0], sizes = [8, 96], strides = [1, 1]} : vector<64x96xf32> to vector<8x96xf32>
    %cst_14 = arith.constant dense<0.000000e+00> : vector<8x96xf32>
    %35 = tpu.matmul %33, %3, %cst_14 {dimension_numbers = #tpu.dot_dimension_numbers<[1], [0], [0], [1], [0, 0, 1, 1], [], []>} : vector<8x32xf32>, vector<32x96xf32>, vector<8x96xf32> -> vector<8x96xf32>
    %36 = vector.extract_strided_slice %34 {offsets = [0, 0], sizes = [8, 64], strides = [1, 1]} : vector<8x96xf32> to vector<8x64xf32>
    %37 = vector.extract_strided_slice %35 {offsets = [0, 0], sizes = [8, 64], strides = [1, 1]} : vector<8x96xf32> to vector<8x64xf32>
    %38 = arith.addf %36, %37 : vector<8x64xf32>
    %39 = arith.negf %38 : vector<8x64xf32>
    %40 = math.exp %39 : vector<8x64xf32>
    %cst_15 = arith.constant 1.000000e+00 : f32
    %41 = vector.broadcast %cst_15 : f32 to vector<8x64xf32>
    %42 = arith.addf %41, %40 : vector<8x64xf32>
    %43 = arith.divf %41, %42 : vector<8x64xf32>
    %44 = vector.extract_strided_slice %43 {offsets = [0, 0], sizes = [8, 32], strides = [1, 1]} : vector<8x64xf32> to vector<8x32xf32>
    %45 = vector.extract_strided_slice %43 {offsets = [0, 32], sizes = [8, 32], strides = [1, 1]} : vector<8x64xf32> to vector<8x32xf32>
    %46 = vector.extract_strided_slice %34 {offsets = [0, 64], sizes = [8, 32], strides = [1, 1]} : vector<8x96xf32> to vector<8x32xf32>
    %47 = vector.extract_strided_slice %35 {offsets = [0, 64], sizes = [8, 32], strides = [1, 1]} : vector<8x96xf32> to vector<8x32xf32>
    %48 = arith.addf %47, %10 : vector<8x32xf32>
    %49 = arith.mulf %44, %48 : vector<8x32xf32>
    %50 = arith.addf %46, %49 : vector<8x32xf32>
    %51 = math.tanh %50 : vector<8x32xf32>
    %cst_16 = arith.constant 1.000000e+00 : f32
    %52 = vector.broadcast %cst_16 : f32 to vector<8x32xf32>
    %53 = arith.subf %52, %45 : vector<8x32xf32>
    %54 = arith.mulf %53, %51 : vector<8x32xf32>
    %55 = arith.mulf %45, %33 : vector<8x32xf32>
    %56 = arith.addf %54, %55 : vector<8x32xf32>
    %57 = vector.extract_strided_slice %8 {offsets = [16, 0], sizes = [8, 96], strides = [1, 1]} : vector<64x96xf32> to vector<8x96xf32>
    %cst_17 = arith.constant dense<0.000000e+00> : vector<8x96xf32>
    %58 = tpu.matmul %56, %3, %cst_17 {dimension_numbers = #tpu.dot_dimension_numbers<[1], [0], [0], [1], [0, 0, 1, 1], [], []>} : vector<8x32xf32>, vector<32x96xf32>, vector<8x96xf32> -> vector<8x96xf32>
    %59 = vector.extract_strided_slice %57 {offsets = [0, 0], sizes = [8, 64], strides = [1, 1]} : vector<8x96xf32> to vector<8x64xf32>
    %60 = vector.extract_strided_slice %58 {offsets = [0, 0], sizes = [8, 64], strides = [1, 1]} : vector<8x96xf32> to vector<8x64xf32>
    %61 = arith.addf %59, %60 : vector<8x64xf32>
    %62 = arith.negf %61 : vector<8x64xf32>
    %63 = math.exp %62 : vector<8x64xf32>
    %cst_18 = arith.constant 1.000000e+00 : f32
    %64 = vector.broadcast %cst_18 : f32 to vector<8x64xf32>
    %65 = arith.addf %64, %63 : vector<8x64xf32>
    %66 = arith.divf %64, %65 : vector<8x64xf32>
    %67 = vector.extract_strided_slice %66 {offsets = [0, 0], sizes = [8, 32], strides = [1, 1]} : vector<8x64xf32> to vector<8x32xf32>
    %68 = vector.extract_strided_slice %66 {offsets = [0, 32], sizes = [8, 32], strides = [1, 1]} : vector<8x64xf32> to vector<8x32xf32>
    %69 = vector.extract_strided_slice %57 {offsets = [0, 64], sizes = [8, 32], strides = [1, 1]} : vector<8x96xf32> to vector<8x32xf32>
    %70 = vector.extract_strided_slice %58 {offsets = [0, 64], sizes = [8, 32], strides = [1, 1]} : vector<8x96xf32> to vector<8x32xf32>
    %71 = arith.addf %70, %10 : vector<8x32xf32>
    %72 = arith.mulf %67, %71 : vector<8x32xf32>
    %73 = arith.addf %69, %72 : vector<8x32xf32>
    %74 = math.tanh %73 : vector<8x32xf32>
    %cst_19 = arith.constant 1.000000e+00 : f32
    %75 = vector.broadcast %cst_19 : f32 to vector<8x32xf32>
    %76 = arith.subf %75, %68 : vector<8x32xf32>
    %77 = arith.mulf %76, %74 : vector<8x32xf32>
    %78 = arith.mulf %68, %56 : vector<8x32xf32>
    %79 = arith.addf %77, %78 : vector<8x32xf32>
    %80 = vector.extract_strided_slice %8 {offsets = [24, 0], sizes = [8, 96], strides = [1, 1]} : vector<64x96xf32> to vector<8x96xf32>
    %cst_20 = arith.constant dense<0.000000e+00> : vector<8x96xf32>
    %81 = tpu.matmul %79, %3, %cst_20 {dimension_numbers = #tpu.dot_dimension_numbers<[1], [0], [0], [1], [0, 0, 1, 1], [], []>} : vector<8x32xf32>, vector<32x96xf32>, vector<8x96xf32> -> vector<8x96xf32>
    %82 = vector.extract_strided_slice %80 {offsets = [0, 0], sizes = [8, 64], strides = [1, 1]} : vector<8x96xf32> to vector<8x64xf32>
    %83 = vector.extract_strided_slice %81 {offsets = [0, 0], sizes = [8, 64], strides = [1, 1]} : vector<8x96xf32> to vector<8x64xf32>
    %84 = arith.addf %82, %83 : vector<8x64xf32>
    %85 = arith.negf %84 : vector<8x64xf32>
    %86 = math.exp %85 : vector<8x64xf32>
    %cst_21 = arith.constant 1.000000e+00 : f32
    %87 = vector.broadcast %cst_21 : f32 to vector<8x64xf32>
    %88 = arith.addf %87, %86 : vector<8x64xf32>
    %89 = arith.divf %87, %88 : vector<8x64xf32>
    %90 = vector.extract_strided_slice %89 {offsets = [0, 0], sizes = [8, 32], strides = [1, 1]} : vector<8x64xf32> to vector<8x32xf32>
    %91 = vector.extract_strided_slice %89 {offsets = [0, 32], sizes = [8, 32], strides = [1, 1]} : vector<8x64xf32> to vector<8x32xf32>
    %92 = vector.extract_strided_slice %80 {offsets = [0, 64], sizes = [8, 32], strides = [1, 1]} : vector<8x96xf32> to vector<8x32xf32>
    %93 = vector.extract_strided_slice %81 {offsets = [0, 64], sizes = [8, 32], strides = [1, 1]} : vector<8x96xf32> to vector<8x32xf32>
    %94 = arith.addf %93, %10 : vector<8x32xf32>
    %95 = arith.mulf %90, %94 : vector<8x32xf32>
    %96 = arith.addf %92, %95 : vector<8x32xf32>
    %97 = math.tanh %96 : vector<8x32xf32>
    %cst_22 = arith.constant 1.000000e+00 : f32
    %98 = vector.broadcast %cst_22 : f32 to vector<8x32xf32>
    %99 = arith.subf %98, %91 : vector<8x32xf32>
    %100 = arith.mulf %99, %97 : vector<8x32xf32>
    %101 = arith.mulf %91, %79 : vector<8x32xf32>
    %102 = arith.addf %100, %101 : vector<8x32xf32>
    %103 = vector.extract_strided_slice %8 {offsets = [32, 0], sizes = [8, 96], strides = [1, 1]} : vector<64x96xf32> to vector<8x96xf32>
    %cst_23 = arith.constant dense<0.000000e+00> : vector<8x96xf32>
    %104 = tpu.matmul %102, %3, %cst_23 {dimension_numbers = #tpu.dot_dimension_numbers<[1], [0], [0], [1], [0, 0, 1, 1], [], []>} : vector<8x32xf32>, vector<32x96xf32>, vector<8x96xf32> -> vector<8x96xf32>
    %105 = vector.extract_strided_slice %103 {offsets = [0, 0], sizes = [8, 64], strides = [1, 1]} : vector<8x96xf32> to vector<8x64xf32>
    %106 = vector.extract_strided_slice %104 {offsets = [0, 0], sizes = [8, 64], strides = [1, 1]} : vector<8x96xf32> to vector<8x64xf32>
    %107 = arith.addf %105, %106 : vector<8x64xf32>
    %108 = arith.negf %107 : vector<8x64xf32>
    %109 = math.exp %108 : vector<8x64xf32>
    %cst_24 = arith.constant 1.000000e+00 : f32
    %110 = vector.broadcast %cst_24 : f32 to vector<8x64xf32>
    %111 = arith.addf %110, %109 : vector<8x64xf32>
    %112 = arith.divf %110, %111 : vector<8x64xf32>
    %113 = vector.extract_strided_slice %112 {offsets = [0, 0], sizes = [8, 32], strides = [1, 1]} : vector<8x64xf32> to vector<8x32xf32>
    %114 = vector.extract_strided_slice %112 {offsets = [0, 32], sizes = [8, 32], strides = [1, 1]} : vector<8x64xf32> to vector<8x32xf32>
    %115 = vector.extract_strided_slice %103 {offsets = [0, 64], sizes = [8, 32], strides = [1, 1]} : vector<8x96xf32> to vector<8x32xf32>
    %116 = vector.extract_strided_slice %104 {offsets = [0, 64], sizes = [8, 32], strides = [1, 1]} : vector<8x96xf32> to vector<8x32xf32>
    %117 = arith.addf %116, %10 : vector<8x32xf32>
    %118 = arith.mulf %113, %117 : vector<8x32xf32>
    %119 = arith.addf %115, %118 : vector<8x32xf32>
    %120 = math.tanh %119 : vector<8x32xf32>
    %cst_25 = arith.constant 1.000000e+00 : f32
    %121 = vector.broadcast %cst_25 : f32 to vector<8x32xf32>
    %122 = arith.subf %121, %114 : vector<8x32xf32>
    %123 = arith.mulf %122, %120 : vector<8x32xf32>
    %124 = arith.mulf %114, %102 : vector<8x32xf32>
    %125 = arith.addf %123, %124 : vector<8x32xf32>
    %126 = vector.extract_strided_slice %8 {offsets = [40, 0], sizes = [8, 96], strides = [1, 1]} : vector<64x96xf32> to vector<8x96xf32>
    %cst_26 = arith.constant dense<0.000000e+00> : vector<8x96xf32>
    %127 = tpu.matmul %125, %3, %cst_26 {dimension_numbers = #tpu.dot_dimension_numbers<[1], [0], [0], [1], [0, 0, 1, 1], [], []>} : vector<8x32xf32>, vector<32x96xf32>, vector<8x96xf32> -> vector<8x96xf32>
    %128 = vector.extract_strided_slice %126 {offsets = [0, 0], sizes = [8, 64], strides = [1, 1]} : vector<8x96xf32> to vector<8x64xf32>
    %129 = vector.extract_strided_slice %127 {offsets = [0, 0], sizes = [8, 64], strides = [1, 1]} : vector<8x96xf32> to vector<8x64xf32>
    %130 = arith.addf %128, %129 : vector<8x64xf32>
    %131 = arith.negf %130 : vector<8x64xf32>
    %132 = math.exp %131 : vector<8x64xf32>
    %cst_27 = arith.constant 1.000000e+00 : f32
    %133 = vector.broadcast %cst_27 : f32 to vector<8x64xf32>
    %134 = arith.addf %133, %132 : vector<8x64xf32>
    %135 = arith.divf %133, %134 : vector<8x64xf32>
    %136 = vector.extract_strided_slice %135 {offsets = [0, 0], sizes = [8, 32], strides = [1, 1]} : vector<8x64xf32> to vector<8x32xf32>
    %137 = vector.extract_strided_slice %135 {offsets = [0, 32], sizes = [8, 32], strides = [1, 1]} : vector<8x64xf32> to vector<8x32xf32>
    %138 = vector.extract_strided_slice %126 {offsets = [0, 64], sizes = [8, 32], strides = [1, 1]} : vector<8x96xf32> to vector<8x32xf32>
    %139 = vector.extract_strided_slice %127 {offsets = [0, 64], sizes = [8, 32], strides = [1, 1]} : vector<8x96xf32> to vector<8x32xf32>
    %140 = arith.addf %139, %10 : vector<8x32xf32>
    %141 = arith.mulf %136, %140 : vector<8x32xf32>
    %142 = arith.addf %138, %141 : vector<8x32xf32>
    %143 = math.tanh %142 : vector<8x32xf32>
    %cst_28 = arith.constant 1.000000e+00 : f32
    %144 = vector.broadcast %cst_28 : f32 to vector<8x32xf32>
    %145 = arith.subf %144, %137 : vector<8x32xf32>
    %146 = arith.mulf %145, %143 : vector<8x32xf32>
    %147 = arith.mulf %137, %125 : vector<8x32xf32>
    %148 = arith.addf %146, %147 : vector<8x32xf32>
    %149 = vector.extract_strided_slice %8 {offsets = [48, 0], sizes = [8, 96], strides = [1, 1]} : vector<64x96xf32> to vector<8x96xf32>
    %cst_29 = arith.constant dense<0.000000e+00> : vector<8x96xf32>
    %150 = tpu.matmul %148, %3, %cst_29 {dimension_numbers = #tpu.dot_dimension_numbers<[1], [0], [0], [1], [0, 0, 1, 1], [], []>} : vector<8x32xf32>, vector<32x96xf32>, vector<8x96xf32> -> vector<8x96xf32>
    %151 = vector.extract_strided_slice %149 {offsets = [0, 0], sizes = [8, 64], strides = [1, 1]} : vector<8x96xf32> to vector<8x64xf32>
    %152 = vector.extract_strided_slice %150 {offsets = [0, 0], sizes = [8, 64], strides = [1, 1]} : vector<8x96xf32> to vector<8x64xf32>
    %153 = arith.addf %151, %152 : vector<8x64xf32>
    %154 = arith.negf %153 : vector<8x64xf32>
    %155 = math.exp %154 : vector<8x64xf32>
    %cst_30 = arith.constant 1.000000e+00 : f32
    %156 = vector.broadcast %cst_30 : f32 to vector<8x64xf32>
    %157 = arith.addf %156, %155 : vector<8x64xf32>
    %158 = arith.divf %156, %157 : vector<8x64xf32>
    %159 = vector.extract_strided_slice %158 {offsets = [0, 0], sizes = [8, 32], strides = [1, 1]} : vector<8x64xf32> to vector<8x32xf32>
    %160 = vector.extract_strided_slice %158 {offsets = [0, 32], sizes = [8, 32], strides = [1, 1]} : vector<8x64xf32> to vector<8x32xf32>
    %161 = vector.extract_strided_slice %149 {offsets = [0, 64], sizes = [8, 32], strides = [1, 1]} : vector<8x96xf32> to vector<8x32xf32>
    %162 = vector.extract_strided_slice %150 {offsets = [0, 64], sizes = [8, 32], strides = [1, 1]} : vector<8x96xf32> to vector<8x32xf32>
    %163 = arith.addf %162, %10 : vector<8x32xf32>
    %164 = arith.mulf %159, %163 : vector<8x32xf32>
    %165 = arith.addf %161, %164 : vector<8x32xf32>
    %166 = math.tanh %165 : vector<8x32xf32>
    %cst_31 = arith.constant 1.000000e+00 : f32
    %167 = vector.broadcast %cst_31 : f32 to vector<8x32xf32>
    %168 = arith.subf %167, %160 : vector<8x32xf32>
    %169 = arith.mulf %168, %166 : vector<8x32xf32>
    %170 = arith.mulf %160, %148 : vector<8x32xf32>
    %171 = arith.addf %169, %170 : vector<8x32xf32>
    %172 = vector.extract_strided_slice %8 {offsets = [56, 0], sizes = [8, 96], strides = [1, 1]} : vector<64x96xf32> to vector<8x96xf32>
    %cst_32 = arith.constant dense<0.000000e+00> : vector<8x96xf32>
    %173 = tpu.matmul %171, %3, %cst_32 {dimension_numbers = #tpu.dot_dimension_numbers<[1], [0], [0], [1], [0, 0, 1, 1], [], []>} : vector<8x32xf32>, vector<32x96xf32>, vector<8x96xf32> -> vector<8x96xf32>
    %174 = vector.extract_strided_slice %172 {offsets = [0, 0], sizes = [8, 64], strides = [1, 1]} : vector<8x96xf32> to vector<8x64xf32>
    %175 = vector.extract_strided_slice %173 {offsets = [0, 0], sizes = [8, 64], strides = [1, 1]} : vector<8x96xf32> to vector<8x64xf32>
    %176 = arith.addf %174, %175 : vector<8x64xf32>
    %177 = arith.negf %176 : vector<8x64xf32>
    %178 = math.exp %177 : vector<8x64xf32>
    %cst_33 = arith.constant 1.000000e+00 : f32
    %179 = vector.broadcast %cst_33 : f32 to vector<8x64xf32>
    %180 = arith.addf %179, %178 : vector<8x64xf32>
    %181 = arith.divf %179, %180 : vector<8x64xf32>
    %182 = vector.extract_strided_slice %181 {offsets = [0, 0], sizes = [8, 32], strides = [1, 1]} : vector<8x64xf32> to vector<8x32xf32>
    %183 = vector.extract_strided_slice %181 {offsets = [0, 32], sizes = [8, 32], strides = [1, 1]} : vector<8x64xf32> to vector<8x32xf32>
    %184 = vector.extract_strided_slice %172 {offsets = [0, 64], sizes = [8, 32], strides = [1, 1]} : vector<8x96xf32> to vector<8x32xf32>
    %185 = vector.extract_strided_slice %173 {offsets = [0, 64], sizes = [8, 32], strides = [1, 1]} : vector<8x96xf32> to vector<8x32xf32>
    %186 = arith.addf %185, %10 : vector<8x32xf32>
    %187 = arith.mulf %182, %186 : vector<8x32xf32>
    %188 = arith.addf %184, %187 : vector<8x32xf32>
    %189 = math.tanh %188 : vector<8x32xf32>
    %cst_34 = arith.constant 1.000000e+00 : f32
    %190 = vector.broadcast %cst_34 : f32 to vector<8x32xf32>
    %191 = arith.subf %190, %183 : vector<8x32xf32>
    %192 = arith.mulf %191, %189 : vector<8x32xf32>
    %193 = arith.mulf %183, %171 : vector<8x32xf32>
    %194 = arith.addf %192, %193 : vector<8x32xf32>
    %c0_35 = arith.constant 0 : index
    %c0_36 = arith.constant 0 : index
    %195 = vector.load %arg7[%c0_35, %c0_36] : memref<8x32xf32, #tpu.memory_space<vmem>>, vector<8x32xf32>
    tpu.vector_store %arg7[%c0_35, %c0_36], %194 {strides = array<i32>} : memref<8x32xf32, #tpu.memory_space<vmem>>, vector<8x32xf32>,
    return
  }
  func.func @transform_0(%arg0: i32) -> (i32, i32) {
    %c0_i32 = arith.constant 0 : i32
    %c0_i32_0 = arith.constant 0 : i32
    %c0_i32_1 = arith.constant 0 : i32
    return %c0_i32, %c0_i32_0 : i32, i32
  }
  func.func @transform_1(%arg0: i32) -> (i32, i32) {
    %c0_i32 = arith.constant 0 : i32
    %c0_i32_0 = arith.constant 0 : i32
    %c0_i32_1 = arith.constant 0 : i32
    return %c0_i32, %c0_i32_0 : i32, i32
  }
  func.func @transform_2(%arg0: i32) -> (i32, i32) {
    %c0_i32 = arith.constant 0 : i32
    %c0_i32_0 = arith.constant 0 : i32
    %c0_i32_1 = arith.constant 0 : i32
    return %c0_i32, %c0_i32_0 : i32, i32
  }
  func.func @transform_3(%arg0: i32) -> (i32, i32) {
    %c0_i32 = arith.constant 0 : i32
    %c0_i32_0 = arith.constant 0 : i32
    %c0_i32_1 = arith.constant 0 : i32
    return %c0_i32, %c0_i32_0 : i32, i32
  }
  func.func @transform_4(%arg0: i32) -> (i32, i32) {
    %c0_i32 = arith.constant 0 : i32
    %c0_i32_0 = arith.constant 0 : i32
    %c0_i32_1 = arith.constant 0 : i32
    return %c0_i32, %c0_i32_0 : i32, i32
  }
  func.func @transform_5(%arg0: i32) -> (i32, i32) {
    %c0_i32 = arith.constant 0 : i32
    %c0_i32_0 = arith.constant 0 : i32
    %c0_i32_1 = arith.constant 0 : i32
    return %c0_i32, %c0_i32_0 : i32, i32
  }
  func.func @transform_6(%arg0: i32) -> (i32, i32) {
    %c0_i32 = arith.constant 0 : i32
    %c0_i32_0 = arith.constant 0 : i32
    %c0_i32_1 = arith.constant 0 : i32
    return %c0_i32, %c0_i32_0 : i32, i32
  }
}

</mosaic_0001>

<bundles_post_ra>
// kernel: tpu_custom_call.1
= control target key start
LH: loop header
LB: loop body
LE: loop exit
PB: predicated region body
PF: predicated region fallthrough
CT: control target
= control target key end

     0   :  { %v1285_v3 = vmov 0.0   ;;  %s1556_s0 = inlined_call_operand.vmem [shape: f32[8,32], index: 0, kind: input, shape index: {}]   ;;  %s1557_s1 = inlined_call_operand.vmem [shape: f32[64,32], index: 1, kind: input, shape index: {}]   ;;  %s1558_s2 = inlined_call_operand.vmem [shape: f32[32,96], index: 2, kind: input, shape index: {}]   ;;  %s1559_s3 = inlined_call_operand.vmem [shape: f32[32,96], index: 3, kind: input, shape index: {}]   ;;  %s1560_s4 = inlined_call_operand.vmem [shape: f32[1,96], index: 4, kind: input, shape index: {}]   ;;  %s1561_s5 = inlined_call_operand.vmem [shape: f32[1,32], index: 5, kind: input, shape index: {}]   ;;  %s1562_s6 = inlined_call_operand.hbm [shape: f32[8,32], index: 6, kind: output, shape index: {}]  }
   0x1   :  { %v36_v0 = vld [vmem:[%s1558_s2 + $0x18] sm:$0xff]  ;;  %v35_v2 = vld [vmem:[%s1558_s2 + $0x10] sm:$0xff]  ;;  %1121 = vmatprep.subr.mxu1 %v1285_v3  ;;  %v34_v5 = vld [vmem:[%s1558_s2 + $0x8] sm:$0xff] }
   0x2   :  { %v1332_v1 = vld [vmem:[%s1559_s3 + $0x18] sm:$0xff]  ;;  %1101 = vmatprep.subr.mxu0 %v36_v0  ;;  %v1341_v4 = vld [vmem:[%s1559_s3 + $0x10] sm:$0xff]  ;;  %v1351_v6 = vld [vmem:[%s1559_s3 + $0x8] sm:$0xff] }
   0x3   :  { %1102 = vmatpush3.msra.mxu0 %v36_v0  ;;  %1122 = vmatpush3.msra.mxu1 %v1332_v1  ;;  %v33_v7 = vld [vmem:[%s1558_s2] sm:$0xff] }
   0x4   :  { %1103 = vmatprep.subr.mxu0 %v35_v2  ;;  %1123 = vmatprep.subr.mxu1 %v1285_v3 }
   0x5   :  { %1104 = vmatpush3.msra.mxu0 %v35_v2  ;;  %1124 = vmatpush3.msra.mxu1 %v1341_v4 }
   0x6   :  { %11 = vsyncpa [#allocation3], 0  ;;  %1105 = vmatprep.subr.mxu0 %v34_v5  ;;  %1125 = vmatprep.subr.mxu1 %v1285_v3  ;;  %v25_v8 = vld [vmem:[%s1557_s1] sm:$0xff]  ;;  %vm49_vm0 = vcmask 261120   ;;  %v26_v10 = vld [vmem:[%s1557_s1 + $0x8] sm:$0xff]  ;;  %vm1286_vm1 = vmmov 0  }
   0x7   :  { %1106 = vmatpush3.msra.mxu0 %v34_v5  ;;  %1126 = vmatpush3.msra.mxu1 %v1351_v6  ;;  %v1365_v9 = vld [vmem:[%s1559_s3] sm:$0xff]  ;;  %s1287_s3 = smov 64   ;;  %v27_v51 = vld [vmem:[%s1557_s1 + $0x10] sm:$0xff]  ;;  %v28_v52 = vld [vmem:[%s1557_s1 + $0x18] sm:$0xff] }
   0x8   :  { %1107 = vmatprep.subr.mxu0 %v33_v7  ;;  %1127 = vmatprep.subr.mxu1 %v1285_v3  ;;  %v24_v11 = vld [vmem:[%s1556_s0] sm:$0xff]  ;;  %s1288_s0 = smov 32   ;;  %v30_v54 = vld [vmem:[%s1557_s1 + $0x28] sm:$0xff]  ;;  %v31_v55 = vld [vmem:[%s1557_s1 + $0x30] sm:$0xff] }
   0x9   :  { %1108 = vmatpush3.msra.mxu0 %v33_v7  ;;  %1109 = vmatprep.mubr.msk.f32.mxu0 %vm49_vm0, %v25_v8  ;;  %v1032_v12 = vld [vmem:[%s1561_s5] ss:$0 sm:$0xff]  ;;  %v32_v56 = vld [vmem:[%s1557_s1 + $0x38] sm:$0xff] }
   0xa   :  { %1128 = vmatpush3.msra.mxu1 %v1365_v9  ;;  %1129 = vmatprep.mubr.msk.f32.mxu1 %vm1286_vm1, %v1285_v3  ;;  %v1411_v18 = vld [vmem:[%s1560_s4] ss:$0 sm:$0xff]  ;;  %s1289_s4 = smov 96  }
   0xb   :  { %1110 = vmatmul.mubr.msk.f32.vlgmr.msra.gmra.mxu0 %vm49_vm0, %v26_v10  ;;  %1130 = vmatmul.mubr.msk.f32.vlgmr.msra.gmra.mxu1 %vm49_vm0, %v24_v11  ;;  %v29_v53 = vld [vmem:[%s1557_s1 + $0x20] sm:$0xff]  ;;  %s1290_s1 = smov [#allocation2]  }
   0xc   :  { %264 = vrot.lane.b32.xlu0 %v1032_v12, %s1287_s3  ;;  %1132 = vmatprep.subr.mxu1 %v1285_v3  ;;  %s1015_s9 = sshll.u32 %s1290_s1, 4  ;;  %s1016_s9 = int_to_ptr.vmem [resolvable:$true] %s1015_s9 }
   0xd   :  { %1133 = vmatpush3.msra.mxu1 %v1332_v1  ;;  %1140 = vmatprep.mubr.msk.f32.mxu1 %vm1286_vm1, %v1285_v3  ;;  %s1263_s10 = scalar_lea.vmem %s1016_s9, 128  ;;  %p1268_p1 = scmp.lt.s32.totalorder %s1016_s9, %s1016_s9 }
   0xe   :  { %1134 = vmatprep.subr.mxu1 %v1285_v3  ;;  %1143 = vmatprep.subr.mxu0 %v1285_v3  ;;  %p1264_p0 = scmp.ne.s32.totalorder %s1016_s9, %s1263_s10  ;;  %p1269_p2 = scmp.lt.s32.totalorder %s1263_s10, %s1263_s10 }
   0xf   :  { %1135 = vmatpush3.msra.mxu1 %v1341_v4  ;;  %1144 = vmatpush3.msra.mxu0 %v1332_v1 }
  0x10   :  { %1136 = vmatprep.subr.mxu1 %v1285_v3  ;;  %1145 = vmatprep.subr.mxu0 %v1285_v3  ;;  %p1270_p3 = por %p1269_p2, %p1268_p1 }
  0x11   :  { %1137 = vmatpush3.msra.mxu1 %v1351_v6  ;;  %1146 = vmatpush3.msra.mxu0 %v1341_v4 }
  0x12   :  { %1138 = vmatprep.subr.mxu1 %v1285_v3  ;;  %1147 = vmatprep.subr.mxu0 %v1285_v3  ;;  %p1271_p4 = pnand %p1270_p3, %p1264_p0 }
  0x13   :  { %1139 = vmatpush3.msra.mxu1 %v1365_v9  ;;  %1148 = vmatpush3.msra.mxu0 %v1351_v6 }
  0x14   :  { %1149 = vmatprep.subr.mxu0 %v1285_v3  ;;  %1154 = vmatprep.subr.mxu1 %v1285_v3 }
  0x15   :  { %1150 = vmatpush3.msra.mxu0 %v1365_v9  ;;  %1112 = vmatprep.mubr.msk.f32.mxu0 %vm49_vm0, %v27_v51 }
  0x16   :  { %1165 = vmatprep.subr.mxu0 %v1285_v3  ;;  %1113 = vmatmul.mubr.msk.f32.gmra.mxu0 %vm49_vm0, %v28_v52 }
  0x17   :  { %1115 = vmatprep.mubr.msk.f32.mxu0 %vm49_vm0, %v29_v53 }
  0x1a   :  { %1116 = vmatmul.mubr.msk.f32.gmra.mxu0 %vm49_vm0, %v30_v54 }
  0x1b   :  { %1118 = vmatprep.mubr.msk.f32.mxu0 %vm49_vm0, %v31_v55 }
  0x1e   :  { %1119 = vmatmul.mubr.msk.f32.gmra.mxu0 %vm49_vm0, %v32_v56 }
  0x1f   :  { %1151 = vmatprep.mubr.msk.f32.mxu0 %vm1286_vm1, %v1285_v3 }
  0x7e   :  { %v1404_v13 = vpop.permute.xlu0 %264 }
  0xcb   :  { %v253_v14 = vpop.f32.mrf.mxu1  ;;  %v1111_v17 = vpop.f32.mrf.mxu0 }
  0xcc   :  { %v267_v15 = vadd.f32 %v1404_v13, %v253_v14  ;;  %v146_v41 = vadd.f32 %v1111_v17, %v1411_v18 }
  0xcd   :  { %v1131_v16 = vpop.f32.mrf.mxu1  ;;  %v140_v19 = vpop.f32.mrf.mxu0 }
  0xce   :  { %269 = vrot.lane.b32.xlu0 %v267_v15, %s1287_s3  ;;  %v141_v20 = vadd.f32 %v1411_v18, %v140_v19 }
  0xd0   :  { %v257_v21 = vadd.f32 %v253_v14, %v141_v20 }
  0xd2   :  { %285 = vrot.lane.b32.xlu0 %v24_v11, %s1288_s0  ;;  %v1034_v22 = vmul.f32 -1.442695, %v257_v21 }
  0xd4   :  { %1215 = vpow2.f32 %v1034_v22 }
  0xd6   :  { %v1114_v0 = vpop.f32.mrf.mxu0 }
  0xd8   :  { %v150_v2 = vpop.f32.mrf.mxu0 }
  0xd9   :  { %v151_v15 = vadd.f32 %v1411_v18, %v150_v2 }
  0xda   :  { %v1471_v5 = vpop.f32.mrf.mxu0 }
  0xdc   :  { %v1473_v7 = vpop.f32.mrf.mxu0 }
  0xdd   :  { %v161_v56 = vadd.f32 %v1411_v18, %v1473_v7 }
  0xde   :  { %v1475_v8 = vpop.f32.mrf.mxu0 }
  0xe0   :  { %v1477_v10 = vpop.f32.mrf.mxu0 }
  0xe1   :  { %v1216_v23 = vpop.eup %1215 }
  0xe2   :  { %v261_v24 = vadd.f32 1.0, %v1216_v23 }
  0xe4   :  { %1217 = vrcp.f32 %v261_v24 }
  0xf1   :  { %v1218_v25 = vpop.eup %1217 }
  0xf2   :  { %v279_v32 = vsub.f32 1.0, %v1218_v25 }
 0x140   :  { %v270_v26 = vpop.permute.xlu0 %269 }
 0x141   :  { %v272_v27 = vmul.f32 %v1218_v25, %v270_v26 }
 0x143   :  { %274 = vrot.lane.b32.xlu1 %v272_v27, %s1287_s3 }
 0x144   :  { %v286_v31 = vpop.permute.xlu0 %285 }
 0x145   :  { %v288_v34 = vmul.f32 %v1218_v25, %v286_v31 }
 0x1b5   :  { %v275_v28 = vpop.permute.xlu1 %274 }
 0x1b6   :  { %v277_v29 = vadd.f32 %v275_v28, %v141_v20 }
 0x1b8   :  { %1219 = vtanh.f32 %v277_v29 }
 0x1c5   :  { %v1220_v30 = vpop.eup %1219 }
 0x1c6   :  { %281 = vrot.lane.b32.xlu1 %v1220_v30, %s1289_s4 }
 0x238   :  { %v282_v33 = vpop.permute.xlu1 %281 }
 0x239   :  { %v284_v35 = vmul.f32 %v282_v33, %v279_v32 }
 0x23b   :  { %v289_v36 = vadd.f32 %v288_v34, %v284_v35 }
 0x23d   :  { %291 = vrot.lane.b32.xlu1 %v289_v36, %s1289_s4 }
 0x2af   :  { %v292_v37 = vpop.permute.xlu1 %291 }
 0x2b0   :  { %1141 = vmatmul.mubr.msk.f32.vlgmr.msra.gmra.mxu1 %vm49_vm0, %v292_v37 }
 0x2b1   :  { %1155 = vmatpush3.msra.mxu1 %v1332_v1  ;;  %1162 = vmatprep.mubr.msk.f32.mxu1 %vm1286_vm1, %v1285_v3 }
 0x2b2   :  { %1156 = vmatprep.subr.mxu1 %v1285_v3 }
 0x2b3   :  { %1157 = vmatpush3.msra.mxu1 %v1341_v4 }
 0x2b4   :  { %1158 = vmatprep.subr.mxu1 %v1285_v3 }
 0x2b5   :  { %1159 = vmatpush3.msra.mxu1 %v1351_v6 }
 0x2b6   :  { %1160 = vmatprep.subr.mxu1 %v1285_v3 }
 0x2b7   :  { %1161 = vmatpush3.msra.mxu1 %v1365_v9 }
 0x2b8   :  { %1176 = vmatprep.subr.mxu1 %v1285_v3 }
 0x370   :  { %v361_v38 = vpop.f32.mrf.mxu1 }
 0x371   :  { %v372_v39 = vadd.f32 %v361_v38, %v1404_v13  ;;  %v365_v42 = vadd.f32 %v361_v38, %v146_v41 }
 0x372   :  { %v1142_v40 = vpop.f32.mrf.mxu1 }
 0x373   :  { %374 = vrot.lane.b32.xlu0 %v372_v39, %s1287_s3  ;;  %v1036_v43 = vmul.f32 -1.442695, %v365_v42 }
 0x375   :  { %1221 = vpow2.f32 %v1036_v43 }
 0x382   :  { %v1222_v44 = vpop.eup %1221 }
 0x383   :  { %v369_v45 = vadd.f32 1.0, %v1222_v44 }
 0x385   :  { %1223 = vrcp.f32 %v369_v45 }
 0x392   :  { %v1224_v46 = vpop.eup %1223 }
 0x393   :  { %v384_v58 = vsub.f32 1.0, %v1224_v46  ;;  %v390_v60 = vmul.f32 %v1224_v46, %v289_v36  ;;  %v156_v36 = vadd.f32 %v1114_v0, %v1411_v18 }
 0x3e5   :  { %v375_v47 = vpop.permute.xlu0 %374 }
 0x3e6   :  { %v377_v48 = vmul.f32 %v1224_v46, %v375_v47 }
 0x3e8   :  { %379 = vrot.lane.b32.xlu1 %v377_v48, %s1287_s3 }
 0x45a   :  { %v380_v49 = vpop.permute.xlu1 %379 }
 0x45b   :  { %v382_v50 = vadd.f32 %v380_v49, %v146_v41 }
 0x45d   :  { %1225 = vtanh.f32 %v382_v50 }
 0x46a   :  { %v1226_v57 = vpop.eup %1225 }
 0x46b   :  { %386 = vrot.lane.b32.xlu0 %v1226_v57, %s1289_s4 }
 0x4dd   :  { %v387_v59 = vpop.permute.xlu0 %386 }
 0x4de   :  { %v389_v61 = vmul.f32 %v387_v59, %v384_v58 }
 0x4e0   :  { %v391_v62 = vadd.f32 %v390_v60, %v389_v61 }
 0x4e2   :  { %393 = vrot.lane.b32.xlu1 %v391_v62, %s1289_s4 }
 0x554   :  { %v394_v63 = vpop.permute.xlu1 %393 }
 0x555   :  { %1152 = vmatmul.mubr.msk.f32.vlgmr.msra.gmra.mxu0 %vm49_vm0, %v394_v63 }
 0x556   :  { %1166 = vmatpush3.msra.mxu0 %v1332_v1  ;;  %1173 = vmatprep.mubr.msk.f32.mxu0 %vm1286_vm1, %v1285_v3 }
 0x557   :  { %1167 = vmatprep.subr.mxu0 %v1285_v3 }
 0x558   :  { %1168 = vmatpush3.msra.mxu0 %v1341_v4 }
 0x559   :  { %1169 = vmatprep.subr.mxu0 %v1285_v3 }
 0x55a   :  { %1170 = vmatpush3.msra.mxu0 %v1351_v6 }
 0x55b   :  { %1171 = vmatprep.subr.mxu0 %v1285_v3 }
 0x55c   :  { %1172 = vmatpush3.msra.mxu0 %v1365_v9 }
 0x55d   :  { %1187 = vmatprep.subr.mxu0 %v1285_v3 }
 0x615   :  { %v463_v11 = vpop.f32.mrf.mxu0 }
 0x616   :  { %v474_v12 = vadd.f32 %v463_v11, %v1404_v13  ;;  %v467_v16 = vadd.f32 %v463_v11, %v151_v15 }
 0x617   :  { %v1153_v14 = vpop.f32.mrf.mxu0 }
 0x618   :  { %476 = vrot.lane.b32.xlu0 %v474_v12, %s1287_s3  ;;  %v1038_v17 = vmul.f32 -1.442695, %v467_v16 }
 0x61a   :  { %1227 = vpow2.f32 %v1038_v17 }
 0x627   :  { %v1228_v19 = vpop.eup %1227 }
 0x628   :  { %v471_v20 = vadd.f32 1.0, %v1228_v19 }
 0x62a   :  { %1229 = vrcp.f32 %v471_v20 }
 0x637   :  { %v1230_v21 = vpop.eup %1229 }
 0x638   :  { %v486_v27 = vsub.f32 1.0, %v1230_v21  ;;  %v492_v29 = vmul.f32 %v1230_v21, %v391_v62 }
 0x68a   :  { %v477_v22 = vpop.permute.xlu0 %476 }
 0x68b   :  { %v479_v23 = vmul.f32 %v1230_v21, %v477_v22 }
 0x68d   :  { %481 = vrot.lane.b32.xlu1 %v479_v23, %s1287_s3 }
 0x6ff   :  { %v482_v24 = vpop.permute.xlu1 %481 }
 0x700   :  { %v484_v25 = vadd.f32 %v482_v24, %v151_v15 }
 0x702   :  { %1231 = vtanh.f32 %v484_v25 }
 0x70f   :  { %v1232_v26 = vpop.eup %1231 }
 0x710   :  { %488 = vrot.lane.b32.xlu0 %v1232_v26, %s1289_s4 }
 0x782   :  { %v489_v28 = vpop.permute.xlu0 %488 }
 0x783   :  { %v491_v30 = vmul.f32 %v489_v28, %v486_v27 }
 0x785   :  { %v493_v31 = vadd.f32 %v492_v29, %v491_v30 }
 0x787   :  { %495 = vrot.lane.b32.xlu1 %v493_v31, %s1289_s4 }
 0x7f9   :  { %v496_v32 = vpop.permute.xlu1 %495 }
 0x7fa   :  { %1163 = vmatmul.mubr.msk.f32.vlgmr.msra.gmra.mxu1 %vm49_vm0, %v496_v32 }
 0x7fb   :  { %1177 = vmatpush3.msra.mxu1 %v1332_v1  ;;  %1184 = vmatprep.mubr.msk.f32.mxu1 %vm1286_vm1, %v1285_v3 }
 0x7fc   :  { %1178 = vmatprep.subr.mxu1 %v1285_v3 }
 0x7fd   :  { %1179 = vmatpush3.msra.mxu1 %v1341_v4 }
 0x7fe   :  { %1180 = vmatprep.subr.mxu1 %v1285_v3 }
 0x7ff   :  { %1181 = vmatpush3.msra.mxu1 %v1351_v6 }
 0x800   :  { %1182 = vmatprep.subr.mxu1 %v1285_v3 }
 0x801   :  { %1183 = vmatpush3.msra.mxu1 %v1365_v9 }
 0x802   :  { %1198 = vmatprep.subr.mxu1 %v1285_v3 }
 0x8ba   :  { %v565_v33 = vpop.f32.mrf.mxu1 }
 0x8bb   :  { %v576_v34 = vadd.f32 %v565_v33, %v1404_v13  ;;  %v569_v37 = vadd.f32 %v565_v33, %v156_v36 }
 0x8bc   :  { %v1164_v35 = vpop.f32.mrf.mxu1 }
 0x8bd   :  { %578 = vrot.lane.b32.xlu0 %v576_v34, %s1287_s3  ;;  %v1040_v38 = vmul.f32 -1.442695, %v569_v37 }
 0x8bf   :  { %1233 = vpow2.f32 %v1040_v38 }
 0x8cc   :  { %v1234_v39 = vpop.eup %1233 }
 0x8cd   :  { %v573_v40 = vadd.f32 1.0, %v1234_v39 }
 0x8cf   :  { %1235 = vrcp.f32 %v573_v40 }
 0x8dc   :  { %v1236_v41 = vpop.eup %1235 }
 0x8dd   :  { %v588_v47 = vsub.f32 1.0, %v1236_v41  ;;  %v594_v49 = vmul.f32 %v1236_v41, %v493_v31 }
 0x92f   :  { %v579_v42 = vpop.permute.xlu0 %578 }
 0x930   :  { %v581_v43 = vmul.f32 %v1236_v41, %v579_v42 }
 0x932   :  { %583 = vrot.lane.b32.xlu1 %v581_v43, %s1287_s3 }
 0x9a4   :  { %v584_v44 = vpop.permute.xlu1 %583 }
 0x9a5   :  { %v586_v45 = vadd.f32 %v584_v44, %v156_v36  ;;  %v171_v36 = vadd.f32 %v1411_v18, %v1477_v10 }
 0x9a7   :  { %1237 = vtanh.f32 %v586_v45 }
 0x9b4   :  { %v1238_v46 = vpop.eup %1237 }
 0x9b5   :  { %590 = vrot.lane.b32.xlu0 %v1238_v46, %s1289_s4 }
 0xa27   :  { %v591_v48 = vpop.permute.xlu0 %590 }
 0xa28   :  { %v593_v50 = vmul.f32 %v591_v48, %v588_v47 }
 0xa2a   :  { %v595_v51 = vadd.f32 %v594_v49, %v593_v50 }
 0xa2c   :  { %597 = vrot.lane.b32.xlu1 %v595_v51, %s1289_s4 }
 0xa9e   :  { %v598_v52 = vpop.permute.xlu1 %597 }
 0xa9f   :  { %1174 = vmatmul.mubr.msk.f32.vlgmr.msra.gmra.mxu0 %vm49_vm0, %v598_v52 }
 0xaa0   :  { %1188 = vmatpush3.msra.mxu0 %v1332_v1  ;;  %1195 = vmatprep.mubr.msk.f32.mxu0 %vm1286_vm1, %v1285_v3 }
 0xaa1   :  { %1189 = vmatprep.subr.mxu0 %v1285_v3 }
 0xaa2   :  { %1190 = vmatpush3.msra.mxu0 %v1341_v4 }
 0xaa3   :  { %1191 = vmatprep.subr.mxu0 %v1285_v3 }
 0xaa4   :  { %1192 = vmatpush3.msra.mxu0 %v1351_v6 }
 0xaa5   :  { %1193 = vmatprep.subr.mxu0 %v1285_v3 }
 0xaa6   :  { %1194 = vmatpush3.msra.mxu0 %v1365_v9 }
 0xb5f   :  { %v667_v53 = vpop.f32.mrf.mxu0 }
 0xb60   :  { %v678_v54 = vadd.f32 %v667_v53, %v1404_v13  ;;  %v671_v57 = vadd.f32 %v667_v53, %v161_v56 }
 0xb61   :  { %v1175_v55 = vpop.f32.mrf.mxu0 }
 0xb62   :  { %680 = vrot.lane.b32.xlu0 %v678_v54, %s1287_s3  ;;  %v1042_v58 = vmul.f32 -1.442695, %v671_v57  ;;  %v176_v55 = vadd.f32 %v1475_v8, %v1411_v18 }
 0xb64   :  { %1239 = vpow2.f32 %v1042_v58 }
 0xb71   :  { %v1240_v59 = vpop.eup %1239 }
 0xb72   :  { %v675_v60 = vadd.f32 1.0, %v1240_v59 }
 0xb74   :  { %1241 = vrcp.f32 %v675_v60 }
 0xb81   :  { %v1242_v61 = vpop.eup %1241 }
 0xb82   :  { %v690_v12 = vsub.f32 1.0, %v1242_v61  ;;  %v696_v7 = vmul.f32 %v1242_v61, %v595_v51 }
 0xbd4   :  { %v681_v62 = vpop.permute.xlu0 %680 }
 0xbd5   :  { %v683_v63 = vmul.f32 %v1242_v61, %v681_v62 }
 0xbd7   :  { %685 = vrot.lane.b32.xlu1 %v683_v63, %s1287_s3 }
 0xc49   :  { %v686_v0 = vpop.permute.xlu1 %685 }
 0xc4a   :  { %v688_v2 = vadd.f32 %v686_v0, %v161_v56 }
 0xc4c   :  { %1243 = vtanh.f32 %v688_v2 }
 0xc59   :  { %v1244_v11 = vpop.eup %1243 }
 0xc5a   :  { %692 = vrot.lane.b32.xlu0 %v1244_v11, %s1289_s4 }
 0xccc   :  { %v693_v14 = vpop.permute.xlu0 %692 }
 0xccd   :  { %v695_v15 = vmul.f32 %v693_v14, %v690_v12 }
 0xccf   :  { %v697_v16 = vadd.f32 %v696_v7, %v695_v15 }
 0xcd1   :  { %699 = vrot.lane.b32.xlu1 %v697_v16, %s1289_s4 }
 0xd43   :  { %v700_v17 = vpop.permute.xlu1 %699 }
 0xd44   :  { %1185 = vmatmul.mubr.msk.f32.vlgmr.msra.gmra.mxu1 %vm49_vm0, %v700_v17 }
 0xd45   :  { %1199 = vmatpush3.msra.mxu1 %v1332_v1  ;;  %1206 = vmatprep.mubr.msk.f32.mxu1 %vm1286_vm1, %v1285_v3  ;;  %v166_v1 = vadd.f32 %v1471_v5, %v1411_v18 }
 0xd46   :  { %1200 = vmatprep.subr.mxu1 %v1285_v3 }
 0xd47   :  { %1201 = vmatpush3.msra.mxu1 %v1341_v4 }
 0xd48   :  { %1202 = vmatprep.subr.mxu1 %v1285_v3 }
 0xd49   :  { %1203 = vmatpush3.msra.mxu1 %v1351_v6 }
 0xd4a   :  { %1204 = vmatprep.subr.mxu1 %v1285_v3 }
 0xd4b   :  { %1205 = vmatpush3.msra.mxu1 %v1365_v9 }
 0xe04   :  { %v769_v19 = vpop.f32.mrf.mxu1 }
 0xe05   :  { %v780_v20 = vadd.f32 %v769_v19, %v1404_v13  ;;  %v773_v22 = vadd.f32 %v769_v19, %v166_v1 }
 0xe06   :  { %v1186_v21 = vpop.f32.mrf.mxu1 }
 0xe07   :  { %782 = vrot.lane.b32.xlu0 %v780_v20, %s1287_s3  ;;  %v1044_v23 = vmul.f32 -1.442695, %v773_v22 }
 0xe09   :  { %1245 = vpow2.f32 %v1044_v23 }
 0xe16   :  { %v1246_v4 = vpop.eup %1245 }
 0xe17   :  { %v777_v24 = vadd.f32 1.0, %v1246_v4 }
 0xe19   :  { %1247 = vrcp.f32 %v777_v24 }
 0xe26   :  { %v1248_v6 = vpop.eup %1247 }
 0xe27   :  { %v792_v28 = vsub.f32 1.0, %v1248_v6  ;;  %v798_v5 = vmul.f32 %v1248_v6, %v697_v16 }
 0xe79   :  { %v783_v25 = vpop.permute.xlu0 %782 }
 0xe7a   :  { %v785_v3 = vmul.f32 %v1248_v6, %v783_v25 }
 0xe7c   :  { %787 = vrot.lane.b32.xlu1 %v785_v3, %s1287_s3 }
 0xeee   :  { %v788_v9 = vpop.permute.xlu1 %787 }
 0xeef   :  { %v790_v26 = vadd.f32 %v788_v9, %v166_v1 }
 0xef1   :  { %1249 = vtanh.f32 %v790_v26 }
 0xefe   :  { %v1250_v27 = vpop.eup %1249 }
 0xeff   :  { %794 = vrot.lane.b32.xlu0 %v1250_v27, %s1289_s4 }
 0xf71   :  { %v795_v29 = vpop.permute.xlu0 %794 }
 0xf72   :  { %v797_v30 = vmul.f32 %v795_v29, %v792_v28 }
 0xf74   :  { %v799_v31 = vadd.f32 %v798_v5, %v797_v30 }
 0xf76   :  { %801 = vrot.lane.b32.xlu1 %v799_v31, %s1289_s4 }
 0xfe8   :  { %v802_v32 = vpop.permute.xlu1 %801 }
 0xfe9   :  { %1196 = vmatmul.mubr.msk.f32.vlgmr.msra.gmra.mxu0 %vm49_vm0, %v802_v32 }
0x10a9   :  { %v871_v33 = vpop.f32.mrf.mxu0 }
0x10aa   :  { %v882_v34 = vadd.f32 %v871_v33, %v1404_v13  ;;  %v875_v37 = vadd.f32 %v871_v33, %v171_v36 }
0x10ab   :  { %v1197_v35 = vpop.f32.mrf.mxu0 }
0x10ac   :  { %884 = vrot.lane.b32.xlu0 %v882_v34, %s1287_s3  ;;  %v1046_v38 = vmul.f32 -1.442695, %v875_v37 }
0x10ae   :  { %1251 = vpow2.f32 %v1046_v38 }
0x10bb   :  { %v1252_v39 = vpop.eup %1251 }
0x10bc   :  { %v879_v40 = vadd.f32 1.0, %v1252_v39 }
0x10be   :  { %1253 = vrcp.f32 %v879_v40 }
0x10cb   :  { %v1254_v41 = vpop.eup %1253 }
0x10cc   :  { %v894_v47 = vsub.f32 1.0, %v1254_v41  ;;  %v900_v10 = vmul.f32 %v1254_v41, %v799_v31 }
0x111e   :  { %v885_v42 = vpop.permute.xlu0 %884 }
0x111f   :  { %v887_v43 = vmul.f32 %v1254_v41, %v885_v42 }
0x1121   :  { %889 = vrot.lane.b32.xlu1 %v887_v43, %s1287_s3 }
0x1193   :  { %v890_v44 = vpop.permute.xlu1 %889 }
0x1194   :  { %v892_v45 = vadd.f32 %v890_v44, %v171_v36 }
0x1196   :  { %1255 = vtanh.f32 %v892_v45 }
0x11a3   :  { %v1256_v46 = vpop.eup %1255 }
0x11a4   :  { %896 = vrot.lane.b32.xlu0 %v1256_v46, %s1289_s4 }
0x1216   :  { %v897_v48 = vpop.permute.xlu0 %896 }
0x1217   :  { %v899_v49 = vmul.f32 %v897_v48, %v894_v47 }
0x1219   :  { %v901_v50 = vadd.f32 %v900_v10, %v899_v49 }
0x121b   :  { %903 = vrot.lane.b32.xlu1 %v901_v50, %s1289_s4 }
0x128d   :  { %v904_v51 = vpop.permute.xlu1 %903 }
0x128e   :  { %1207 = vmatmul.mubr.msk.f32.vlgmr.msra.gmra.mxu1 %vm49_vm0, %v904_v51 }
0x134e   :  { %v973_v52 = vpop.f32.mrf.mxu1 }
0x134f   :  { %v984_v53 = vadd.f32 %v973_v52, %v1404_v13  ;;  %v977_v56 = vadd.f32 %v973_v52, %v176_v55 }
0x1350   :  { %v1208_v54 = vpop.f32.mrf.mxu1 }
0x1351   :  { %986 = vrot.lane.b32.xlu0 %v984_v53, %s1287_s3  ;;  %v1048_v57 = vmul.f32 -1.442695, %v977_v56 }
0x1353   :  { %1257 = vpow2.f32 %v1048_v57 }
0x1360   :  { %v1258_v58 = vpop.eup %1257 }
0x1361   :  { %v981_v59 = vadd.f32 1.0, %v1258_v58 }
0x1363   :  { %1259 = vrcp.f32 %v981_v59 }
0x1370   :  { %v1260_v60 = vpop.eup %1259 }
0x1371   :  { %v996_v2 = vsub.f32 1.0, %v1260_v60  ;;  %v1002_v18 = vmul.f32 %v1260_v60, %v901_v50 }
0x13c3   :  { %v987_v61 = vpop.permute.xlu0 %986 }
0x13c4   :  { %v989_v62 = vmul.f32 %v1260_v60, %v987_v61 }
0x13c6   :  { %991 = vrot.lane.b32.xlu1 %v989_v62, %s1287_s3 }
0x1438   :  { %v992_v63 = vpop.permute.xlu1 %991 }
0x1439   :  { %v994_v0 = vadd.f32 %v992_v63, %v176_v55 }
0x143b   :  { %1261 = vtanh.f32 %v994_v0 }
0x1448   :  { %v1262_v13 = vpop.eup %1261 }
0x1449   :  { %998 = vrot.lane.b32.xlu0 %v1262_v13, %s1289_s4 }
0x14bb   :  { %v999_v11 = vpop.permute.xlu0 %998 }
0x14bc   :  { %v1001_v8 = vmul.f32 %v999_v11, %v996_v2 }
0x14be   :  { %v1003_v12 = vadd.f32 %v1002_v18, %v1001_v8 }
0x14c0   :  { %1005 = vrot.lane.b32.xlu1 %v1003_v12, %s1289_s4 }
0x1532   :  { %v1006_v14 = vpop.permute.xlu1 %1005 }
0x1533   :  { %1008 = vst.msk [vmem:[#allocation2] sm:$0xff] %vm49_vm0, %v1006_v14 }
0x1534   :  { %1274 = shalt.err (!%p1271_p4)
}
0x1535   :  { %1018 = dma.vmem_to_hbm [thread:$0]  %s1016_s9, 128, %s1562_s6, [#allocation3]  }
0x1536   :  { %1283 = dma.done.wait [#allocation3], 128  }
0x1537   :  { %1284 = vsyncadd [#allocation3], 4294967168 }
0x1538   :  { %1022 = vsyncpa [#allocation3], 1 }

</bundles_post_ra>
